<compile_context>
chip_gen: v7x
topology: tpu7x:2x2x1
jax: 0.10.0
libtpu: 0.0.40
codegen_flags: <defaults>
</compile_context>

<pallas_src>
import jax
import jax.numpy as jnp
from jax.experimental import pallas as pl
from jax.experimental.pallas import tpu as pltpu

_LANE = 128                        # vreg lane width: last block dim pads to this
_SUBLANE = 8
_VMEM_BUDGET = 12 * 1024 * 1024    # padded, double-buffered input footprint target
_VMEM_LIMIT = 32 * 1024 * 1024     # explicit scoped-VMEM limit (safe on v5e/v6e/v7x)


def _tile_nll_sum(logits_raw, labels_col, row_offset, batch_size, mask_rows):
    """Sum of per-row NLL for one (tb, C) logits tile (f32 math in-kernel)."""
    logits = logits_raw.astype(jnp.float32)        # single in-kernel cast
    tb, num_classes = logits.shape

    # Numerically stable log-sum-exp along the class (lane) axis.
    row_max = jnp.max(logits, axis=-1, keepdims=True)                  # (tb, 1)
    shifted = logits - row_max                                         # (tb, C)
    lse = jnp.log(jnp.sum(jnp.exp(shifted), axis=-1, keepdims=True))   # (tb, 1)

    # Pick the shifted logit at the label index with a lane mask + reduce
    # (VALU + XLU; no gather, no one-hot matmul, no full log_probs tile).
    col_ids = jax.lax.broadcasted_iota(jnp.int32, (tb, num_classes), 1)
    label_shifted = jnp.sum(jnp.where(col_ids == labels_col, shifted, 0.0),
                            axis=-1, keepdims=True)                    # (tb, 1)
    nll = lse - label_shifted                                          # (tb, 1)

    if mask_rows:
        # Ragged last tile: rows past B hold undefined data (possibly NaN/Inf).
        # Must stay a select (jnp.where), NOT a 0/1 multiply, so garbage rows
        # cannot propagate NaN into the sum.
        row_ids = jax.lax.broadcasted_iota(jnp.int32, (tb, 1), 0) + row_offset
        nll = jnp.where(row_ids < batch_size, nll, 0.0)
    return jnp.sum(nll)


def _make_single_block_kernel(batch_size):
    inv_b = 1.0 / float(batch_size)

    def kernel(labels_ref, logits_ref, loss_ref):
        # labels_ref: (B, 1) i32 VMEM; logits_ref: (B, C) native-dtype VMEM
        # loss_ref:   (1, 1) f32 SMEM output
        total = _tile_nll_sum(logits_ref[...], labels_ref[...],
                              0, batch_size, mask_rows=False)
        loss_ref[0, 0] = total * jnp.float32(inv_b)

    return kernel


def _make_tiled_kernel(batch_size, tile_rows):
    ragged = (batch_size % tile_rows) != 0

    def kernel(labels_ref, logits_ref, partial_ref):
        # Each grid step writes its tile's NLL sum into element [0, 0] of its own
        # (8, 128) output block (disjoint blocks -> race-free under "parallel").
        pid = pl.program_id(0)
        total = _tile_nll_sum(logits_ref[...], labels_ref[...],
                              pid * tile_rows, batch_size, mask_rows=ragged)
        r = jax.lax.broadcasted_iota(jnp.int32, (_SUBLANE, _LANE), 0)
        c = jax.lax.broadcasted_iota(jnp.int32, (_SUBLANE, _LANE), 1)
        partial_ref[...] = jnp.where((r == 0) & (c == 0), total, 0.0)

    return kernel


def _pick_batch_tile(num_classes, logits_itemsize):
    """Largest batch tile whose *padded*, double-buffered footprint fits budget."""
    c_pad = -(-num_classes // _LANE) * _LANE             # logits lane padding (40 -> 128)
    per_row = 2 * (c_pad * logits_itemsize               # logits block, 2 buffers
                   + _LANE * 4)                          # (TB,1) i32 labels pad 1 -> 128 lanes
    tb = _VMEM_BUDGET // per_row
    return max(_LANE, (tb // _LANE) * _LANE)             # multiple of 128 (8,128)-legal


def cross_entropy_loss(cls_logits, cls_labels, *, tile_rows=None):
    """Pallas equivalent of F.cross_entropy(cls_logits, cls_labels) (mean)."""
    B, C = cls_logits.shape
    labels_col = cls_labels.astype(jnp.int32).reshape(B, 1)
    itemsize = cls_logits.dtype.itemsize

    tb = tile_rows if tile_rows is not None else _pick_batch_tile(C, itemsize)
    cost = pl.CostEstimate(flops=5 * B * C,
                           transcendentals=B * C,
                           bytes_accessed=B * C * itemsize + B * 4 + 4)

    if B <= tb:
        # Common case: a single grid step (kernel is launch/step-overhead bound),
        # mean computed in-kernel, scalar SMEM output, no accumulator.
        loss = pl.pallas_call(
            _make_single_block_kernel(B),
            out_shape=jax.ShapeDtypeStruct((1, 1), jnp.float32),
            grid=(1,),
            in_specs=[
                pl.BlockSpec((B, 1), lambda i: (0, 0)),   # labels column
                pl.BlockSpec((B, C), lambda i: (0, 0)),   # logits, native dtype
            ],
            out_specs=pl.BlockSpec(memory_space=pltpu.SMEM),
            compiler_params=pltpu.CompilerParams(
                dimension_semantics=("arbitrary",),
                vmem_limit_bytes=_VMEM_LIMIT),
            cost_estimate=cost,
        )(labels_col, cls_logits)
        return loss[0, 0]

    # Large-B path: per-tile partial sums, batch axis "parallel" (shards across
    # v7x's two TensorCores; no shared state across steps); final 1/B mean is one
    # tiny XLA reduce over the mostly-zero partials slab.
    num_tiles = -(-B // tb)
    partials = pl.pallas_call(
        _make_tiled_kernel(B, tb),
        out_shape=jax.ShapeDtypeStruct((num_tiles * _SUBLANE, _LANE), jnp.float32),
        grid=(num_tiles,),
        in_specs=[
            pl.BlockSpec((tb, 1), lambda i: (i, 0)),      # labels tile
            pl.BlockSpec((tb, C), lambda i: (i, 0)),      # logits tile
        ],
        out_specs=pl.BlockSpec((_SUBLANE, _LANE), lambda i: (i, 0)),
        compiler_params=pltpu.CompilerParams(
            dimension_semantics=("parallel",),
            vmem_limit_bytes=_VMEM_LIMIT),
        cost_estimate=cost,
    )(labels_col, cls_logits)
    return jnp.sum(partials) / B


def s2cnn_cls_loss(preds, labels):
    """Mirror of S2CNNClsLoss.forward."""
    cls_logits = preds["cls_logits"]
    cls_labels = labels["cls_labels"]
    cls_loss = cross_entropy_loss(cls_logits, cls_labels)
    return {"cls_loss": cls_loss}


if __name__ == "__main__":
    key = jax.random.PRNGKey(0)
    k1, k2, k3, k4, k5, k6 = jax.random.split(key, 6)

    # --- test 1: f32 logits, ModelNet40-style classifier head (single block) ---
    B, C = 8, 40
    cls_logits = jax.random.normal(k1, (B, C), dtype=jnp.float32)
    cls_labels = jax.random.randint(k2, (B,), 0, C, dtype=jnp.int32)
    loss_dict = s2cnn_cls_loss({"cls_logits": cls_logits},
                               {"cls_labels": cls_labels})
    loss = jax.block_until_ready(loss_dict["cls_loss"])
    logp = jax.nn.log_softmax(cls_logits, axis=-1)
    ref = -jnp.mean(logp[jnp.arange(B), cls_labels])
    assert jnp.allclose(loss, ref, atol=1e-5, rtol=1e-5), (loss, ref)

    # --- test 2: bf16 logits in native dtype (no wrapper cast), odd batch ---
    B2, C2 = 10, 40
    logits2 = jax.random.normal(k3, (B2, C2), dtype=jnp.float32).astype(jnp.bfloat16)
    labels2 = jax.random.randint(k4, (B2,), 0, C2, dtype=jnp.int32)
    loss2 = jax.block_until_ready(cross_entropy_loss(logits2, labels2))
    logp2 = jax.nn.log_softmax(logits2.astype(jnp.float32), axis=-1)
    ref2 = -jnp.mean(logp2[jnp.arange(B2), labels2])
    assert jnp.allclose(loss2, ref2, atol=1e-5, rtol=1e-5), (loss2, ref2)

    # --- test 3: force the multi-tile "parallel" partial-sum path (ragged tail) ---
    B3, C3 = 300, 40
    logits3 = jax.random.normal(k5, (B3, C3), dtype=jnp.float32)
    labels3 = jax.random.randint(k6, (B3,), 0, C3, dtype=jnp.int32)
    loss3 = jax.block_until_ready(
        cross_entropy_loss(logits3, labels3, tile_rows=128))
    logp3 = jax.nn.log_softmax(logits3, axis=-1)
    ref3 = -jnp.mean(logp3[jnp.arange(B3), labels3])
    assert jnp.allclose(loss3, ref3, atol=1e-4, rtol=1e-4), (loss3, ref3)

    print("KERNEL_OK")
</pallas_src>

<mosaic_0001>
module attributes {stable_mosaic.version = 11 : i64} {
  func.func @kernel(%arg0: i32, %arg1: memref<8x1xi32, #tpu.memory_space<vmem>>, %arg2: memref<8x40xf32, #tpu.memory_space<vmem>>, %arg3: memref<1x1xf32, #tpu.memory_space<smem>>) attributes {dimension_semantics = [#tpu.dimension_semantics<arbitrary>], iteration_bounds = array<i64: 1>, scalar_prefetch = 0 : i64, scratch_operands = 0 : i64, tpu.core_type = #tpu.core_type<tc>, window_params = [{pipeline_mode = #tpu.pipeline_mode<synchronous>, transform_indices = @transform_0, window_bounds = array<i64: 8, 1>}, {pipeline_mode = #tpu.pipeline_mode<synchronous>, transform_indices = @transform_1, window_bounds = array<i64: 8, 40>}, {transform_indices = @transform_2, window_bounds = array<i64: 1, 1>}]} {
    %c0 = arith.constant 0 : index
    %c0_0 = arith.constant 0 : index
    %0 = vector.load %arg2[%c0, %c0_0] : memref<8x40xf32, #tpu.memory_space<vmem>>, vector<8x40xf32>
    %c0_1 = arith.constant 0 : index
    %c0_2 = arith.constant 0 : index
    %1 = vector.load %arg1[%c0_1, %c0_2] : memref<8x1xi32, #tpu.memory_space<vmem>>, vector<8x1xi32>
    %cst = arith.constant dense<0xFF800000> : vector<8xf32>
    %2 = vector.multi_reduction <maximumf>, %0, %cst [1] : vector<8x40xf32> to vector<8xf32>
    %3 = vector.shape_cast %2 : vector<8xf32> to vector<8x1xf32>
    %4 = vector.broadcast %3 : vector<8x1xf32> to vector<8x40xf32>
    %5 = arith.subf %0, %4 : vector<8x40xf32>
    %6 = math.exp %5 : vector<8x40xf32>
    %cst_3 = arith.constant dense<0.000000e+00> : vector<8xf32>
    %7 = vector.multi_reduction <add>, %6, %cst_3 [1] : vector<8x40xf32> to vector<8xf32>
    %8 = vector.shape_cast %7 : vector<8xf32> to vector<8x1xf32>
    %9 = math.log %8 : vector<8x1xf32>
    %10 = tpu.iota {dimensions = array<i32: 1>} : vector<8x40xi32>
    %11 = vector.broadcast %1 : vector<8x1xi32> to vector<8x40xi32>
    %12 = arith.cmpi eq, %10, %11 : vector<8x40xi32>
    %cst_4 = arith.constant 0.000000e+00 : f32
    %13 = vector.broadcast %cst_4 : f32 to vector<8x40xf32>
    %14 = arith.select %12, %5, %13 : vector<8x40xi1>, vector<8x40xf32>
    %cst_5 = arith.constant dense<0.000000e+00> : vector<8xf32>
    %15 = vector.multi_reduction <add>, %14, %cst_5 [1] : vector<8x40xf32> to vector<8xf32>
    %16 = vector.shape_cast %15 : vector<8xf32> to vector<8x1xf32>
    %17 = arith.subf %9, %16 : vector<8x1xf32>
    %18 = vector.shape_cast %17 : vector<8x1xf32> to vector<1x8x1xf32>
    %cst_6 = arith.constant dense<0.000000e+00> : vector<1xf32>
    %19 = vector.multi_reduction <add>, %18, %cst_6 [1, 2] : vector<1x8x1xf32> to vector<1xf32>
    %20 = vector.shape_cast %19 : vector<1xf32> to vector<1x1x1xf32>
    %21 = vector.extract %20[0, 0, 0] : f32 from vector<1x1x1xf32>
    %cst_7 = arith.constant 1.250000e-01 : f32
    %22 = arith.mulf %21, %cst_7 : f32
    %c0_8 = arith.constant 0 : index
    %c0_9 = arith.constant 0 : index
    %23 = memref.load %arg3[%c0_8, %c0_9] : memref<1x1xf32, #tpu.memory_space<smem>>
    memref.store %22, %arg3[%c0_8, %c0_9] : memref<1x1xf32, #tpu.memory_space<smem>>
    return
  }
  func.func @transform_0(%arg0: i32) -> (i32, i32) {
    %c0_i32 = arith.constant 0 : i32
    %c0_i32_0 = arith.constant 0 : i32
    %c0_i32_1 = arith.constant 0 : i32
    return %c0_i32, %c0_i32_0 : i32, i32
  }
  func.func @transform_1(%arg0: i32) -> (i32, i32) {
    %c0_i32 = arith.constant 0 : i32
    %c0_i32_0 = arith.constant 0 : i32
    %c0_i32_1 = arith.constant 0 : i32
    return %c0_i32, %c0_i32_0 : i32, i32
  }
  func.func @transform_2(%arg0: i32) -> (i32, i32) {
    %c0_i32 = arith.constant 0 : i32
    %c0_i32_0 = arith.constant 0 : i32
    %c0_i32_1 = arith.constant 0 : i32
    return %c0_i32, %c0_i32_0 : i32, i32
  }
}

</mosaic_0001>

<bundles_post_ra>
// kernel: tpu_custom_call.1
= control target key start
LH: loop header
LB: loop body
LE: loop exit
PB: predicated region body
PF: predicated region fallthrough
CT: control target
= control target key end

     0   :  { %vm14_vm0 = vcmask 326656   ;;  %s123_s0 = inlined_call_operand.vmem [shape: s32[8,1], index: 0, kind: input, shape index: {}]   ;;  %s124_s1 = inlined_call_operand.vmem [shape: f32[8,40], index: 1, kind: input, shape index: {}]   ;;  %s125_s2 = inlined_call_operand.hbm [shape: f32[1,1], index: 2, kind: output, shape index: {}]  }
   0x1   :  { %v12_v0 = vld [vmem:[%s124_s1] sm:$0xff] }
   0x2   :  { %7 = vsyncpa [#allocation3], 0  ;;  %v15_v1 = vsel %vm14_vm0, %v12_v0, -inf  ;;  %v85_v2 = vmov 0   ;;  %v13_v3 = vld [vmem:[%s123_s0] sm:$0xff]  ;;  %v26_v7 = vlaneseq  ;;  %vm37_vm2 = vcmask 7168  }
   0x3   :  { %68 = vset.pattern.permute.xlu0 %v85_v2  ;;  %s73_s15 = scalar_lea.hbm %s125_s2, 16 }
   0x4   :  { %16 = vmax.xlane.f32.xlu0 %v15_v1  ;;  %v27_v8 = vand.u32 127, %v26_v7  ;;  %p74_p0 = scmp.ne.s32.totalorder %s125_s2, %s73_s15  ;;  %p77_p1 = scmp.lt.u32.totalorder %s73_s15, %s125_s2 }
   0x6   :  { %p79_p2 = pnand %p77_p1, %p74_p0 }
  0x1a   :  { %29 = vperm.xlu0 %68, %v13_v3  }
  0x91   :  { %v17_v4 = vpop.xlane.xlu0 %16 }
  0x92   :  { %v18_v5 = vsub.f32 %v12_v0, %v17_v4 }
  0x94   :  { %v19_v6 = vmul.f32 1.442695, %v18_v5 }
  0x96   :  { %69 = vpow2.f32 %v19_v6 }
  0x99   :  { %v30_v9 = vpop.permute.xlu0 %29 }
  0x9a   :  { %vm31_vm1 = vcmp.eq.s32.totalorder %v27_v8, %v30_v9 }
  0x9b   :  { %v32_v12 = vsel %vm31_vm1, %v18_v5, 0.0 }
  0x9c   :  { %v33_v13 = vsel %vm14_vm0, %v32_v12, 0.0 }
  0xa0   :  { %v70_v10 = vpop.eup %69 }
  0xa1   :  { %v21_v11 = vsel %vm14_vm0, %v70_v10, 0.0 }
  0xa2   :  { %22 = vadd.xlane.f32.xlu1 %v21_v11 }
  0xa6   :  { %34 = vadd.xlane.f32.xlu1 %v33_v13 }
 0x12f   :  { %v23_v14 = vpop.xlane.xlu1 %22 }
 0x130   :  { %71 = vlog2.f32 %v23_v14 }
 0x133   :  { %v35_v17 = vpop.xlane.xlu1 %34 }
 0x13a   :  { %v72_v15 = vpop.eup %71 }
 0x13b   :  { %v25_v16 = vmul.f32 0.6931472, %v72_v15 }
 0x13d   :  { %v36_v18 = vsub.f32 %v25_v16, %v35_v17 }
 0x13f   :  { %v38_v19 = vsel %vm37_vm2, %v36_v18, 0.0 }
 0x140   :  { %39 = vadd.xlane.f32.xlu1 %v38_v19 }
 0x1cd   :  { %v40_v20 = vpop.xlane.xlu1 %39 }
 0x1ce   :  { %v41_v21 = vrot.slane %v40_v20, 4 }
 0x1d0   :  { %v42_v22 = vadd.f32 %v41_v21, %v40_v20 }
 0x1d2   :  { %v43_v23 = vrot.slane %v42_v22, 2 }
 0x1d4   :  { %v44_v24 = vadd.f32 %v43_v23, %v42_v22 }
 0x1d6   :  { %v45_v25 = vrot.slane %v44_v24, 1 }
 0x1d8   :  { %v46_v26 = vadd.f32 %v45_v25, %v44_v24 }
 0x1da   :  { %64 = vpush %v46_v26 }
 0x20b   :  { %s65_s0 = spop %64 }
 0x20c   :  { %s48_s1 = smul.f32 0.125, %s65_s0 }
 0x20e   :  { %50 = sst [smem:[#allocation2]] %s48_s1 }
 0x20f   :  { %82 = shalt.err (!%p79_p2)
}
 0x210   :  { %s86_s20 = smov [#allocation2]  }
 0x211   :  { %58 = dma.smem_to_hbm %s86_s20, 16, %s125_s2, [#allocation3]  }
 0x212   :  { %83 = dma.done.wait [#allocation3], 16  }
 0x213   :  { %84 = vsyncadd [#allocation3], 4294967280 }
 0x214   :  { %62 = sfence }
 0x215   :  { %63 = vsyncpa [#allocation3], 1 }

</bundles_post_ra>
